<compile_context>
chip_gen: v5e
topology: v5e:2x2
jax: 0.10.0
libtpu: 0.0.40
codegen_flags: <defaults>
</compile_context>

<pallas_src>
import jax
import jax.numpy as jnp
from jax.experimental import pallas as pl
from jax.experimental.pallas import tpu as pltpu

# Synthetic env dims (mfcc_env not available): NUM_STATES features in,
# NUM_ACTIONS logits out.
NUM_STATES = 32
NUM_ACTIONS = 8
HIDDEN = 256
OUT_PAD = 128           # lane-dense padded logit width (>= NUM_ACTIONS)
MAX_TILE_B = 4096       # large batch tile: x 2x512 KiB, out 2x1 MiB bf16,
                        # h scratch ~8 MiB, weights ~0.2 MiB -> well under
                        # the 32 MiB scoped limit and v7x's 64 MiB VMEM.


def _round_up(n, m):
    return ((n + m - 1) // m) * m


def _mlp_kernel(x_ref, w1_ref, b1_ref, w2_ref, b2_ref, w3_ref, b3_ref, o_ref):
    # Biases read once (hoisted); elementwise path stays in f32.
    b1 = b1_ref[...]
    b2 = b2_ref[...]
    b3 = b3_ref[...]
    # Cast f32 input to bf16 in-kernel (free VPU cast, avoids an extra
    # wrapper-side HBM round trip), then fc1 + relu on the MXU with f32 acc.
    xb = x_ref[...].astype(jnp.bfloat16)
    h = jnp.dot(xb, w1_ref[...], preferred_element_type=jnp.float32)
    h = jnp.maximum(h + b1, 0.0)
    # fc2 + relu
    h = jnp.dot(h.astype(jnp.bfloat16), w2_ref[...],
                preferred_element_type=jnp.float32)
    h = jnp.maximum(h + b2, 0.0)
    # fc3 (action logits, no activation). OUT_PAD=128 lanes -> unmasked stores;
    # bf16 output halves the dominant writeback traffic.
    out = jnp.dot(h.astype(jnp.bfloat16), w3_ref[...],
                  preferred_element_type=jnp.float32)
    o_ref[...] = (out + b3).astype(o_ref.dtype)


def net_forward_padded(x, params):
    """Pallas forward returning the padded [b_pad, OUT_PAD] bf16 logit block.

    x: [B, NUM_STATES] float32. Prefer consuming this padded block directly
    (slice at the consumer, where XLA can fuse it) for large B.
    """
    w1, b1, w2, b2, w3p, b3p = params
    B = x.shape[0]

    # Batch tile: multiple of 16 (bf16 sublane packing), capped by MAX_TILE_B,
    # and chosen so the grid has >=2 steps when possible (v7x has 2 TCs).
    b_pad16 = _round_up(B, 16)
    tile_b = min(MAX_TILE_B, _round_up(pl.cdiv(b_pad16, 2), 16))
    tile_b = max(tile_b, 16)
    b_pad = _round_up(B, tile_b)

    xp = x
    if b_pad != B:
        xp = jnp.pad(x, ((0, b_pad - B), (0, 0)))

    # Weights/biases: same block for every grid step -> stay VMEM-resident.
    # (pipeline_mode=pl.Buffered(1) would drop the unused second copy; ~0.2 MiB
    # of hygiene only, left at the default for portability.)
    resident = lambda shape: pl.BlockSpec(shape, lambda i: (0, 0))

    out = pl.pallas_call(
        _mlp_kernel,
        out_shape=jax.ShapeDtypeStruct((b_pad, OUT_PAD), jnp.bfloat16),
        grid=(b_pad // tile_b,),
        in_specs=[
            pl.BlockSpec((tile_b, NUM_STATES), lambda i: (i, 0)),
            resident(w1.shape), resident(b1.shape),
            resident(w2.shape), resident(b2.shape),
            resident(w3p.shape), resident(b3p.shape),
        ],
        out_specs=pl.BlockSpec((tile_b, OUT_PAD), lambda i: (i, 0)),
        compiler_params=pltpu.CompilerParams(
            dimension_semantics=("parallel",),   # shard batch tiles across TCs
            vmem_limit_bytes=32 * 1024 * 1024,
        ),
    )(xp, w1, b1, w2, b2, w3p, b3p)
    return out


def net_forward(x, params):
    """Pallas forward for the 3-layer MLP. Returns [B, NUM_ACTIONS] logits."""
    B = x.shape[0]
    out = net_forward_padded(x, params)
    # For large B, prefer slicing at the consumer (fusable) instead of here.
    return out[:B, :NUM_ACTIONS]


def init_params(key):
    """Deterministic param init mimicking nn.Linear shapes (stored [in, out]).

    Weights are bf16 (MXU-native on all gens); biases are f32. The final
    layer is pre-padded to OUT_PAD lanes here (once), not per forward call.
    """
    ks = jax.random.split(key, 6)

    def linear(kw, kb, fan_in, fan_out):
        bound = 1.0 / float(fan_in) ** 0.5
        w = jax.random.uniform(kw, (fan_in, fan_out), jnp.float32, -bound, bound)
        b = jax.random.uniform(kb, (1, fan_out), jnp.float32, -bound, bound)
        return w.astype(jnp.bfloat16), b

    w1, b1 = linear(ks[0], ks[1], NUM_STATES, HIDDEN)
    w2, b2 = linear(ks[2], ks[3], HIDDEN, HIDDEN)
    w3, b3 = linear(ks[4], ks[5], HIDDEN, NUM_ACTIONS)
    # Zero-pad the last layer once so the kernel output is lane-dense.
    w3p = jnp.pad(w3, ((0, 0), (0, OUT_PAD - NUM_ACTIONS)))
    b3p = jnp.pad(b3, ((0, 0), (0, OUT_PAD - NUM_ACTIONS)))
    return (w1, b1, w2, b2, w3p, b3p)


def reference_forward(x, params):
    """Pure-JAX reference with the same bf16-operand / f32-accumulate math."""
    w1, b1, w2, b2, w3p, b3p = params
    w3 = w3p[:, :NUM_ACTIONS]
    b3 = b3p[:, :NUM_ACTIONS]
    h = jnp.dot(x.astype(jnp.bfloat16), w1,
                preferred_element_type=jnp.float32) + b1
    h = jnp.maximum(h, 0.0)
    h = jnp.dot(h.astype(jnp.bfloat16), w2,
                preferred_element_type=jnp.float32) + b2
    h = jnp.maximum(h, 0.0)
    return jnp.dot(h.astype(jnp.bfloat16), w3,
                   preferred_element_type=jnp.float32) + b3


if __name__ == "__main__":
    key = jax.random.PRNGKey(0)
    kx, kp = jax.random.split(key)
    batch = 2
    x = jax.random.normal(kx, (batch, NUM_STATES), jnp.float32)
    params = init_params(kp)

    out = net_forward(x, params)
    out = jax.block_until_ready(out)

    ref = reference_forward(x, params)
    assert out.shape == (batch, NUM_ACTIONS)
    # Kernel output is bf16; compare against the f32 reference loosely.
    assert jnp.allclose(out.astype(jnp.float32), ref, atol=2e-2, rtol=2e-2)
    print("KERNEL_OK")
</pallas_src>

<mosaic_0001>
module attributes {stable_mosaic.version = 11 : i64} {
  func.func @_mlp_kernel(%arg0: i32, %arg1: memref<16x32xf32, #tpu.memory_space<vmem>>, %arg2: memref<32x256xbf16, #tpu.memory_space<vmem>>, %arg3: memref<1x256xf32, #tpu.memory_space<vmem>>, %arg4: memref<256x256xbf16, #tpu.memory_space<vmem>>, %arg5: memref<1x256xf32, #tpu.memory_space<vmem>>, %arg6: memref<256x128xbf16, #tpu.memory_space<vmem>>, %arg7: memref<1x128xf32, #tpu.memory_space<vmem>>, %arg8: memref<16x128xbf16, #tpu.memory_space<vmem>>) attributes {dimension_semantics = [#tpu.dimension_semantics<parallel>], iteration_bounds = array<i64: 1>, scalar_prefetch = 0 : i64, scratch_operands = 0 : i64, tpu.core_type = #tpu.core_type<tc>, window_params = [{transform_indices = @transform_0, window_bounds = array<i64: 16, 32>}, {pipeline_mode = #tpu.pipeline_mode<synchronous>, transform_indices = @transform_1, window_bounds = array<i64: 32, 256>}, {pipeline_mode = #tpu.pipeline_mode<synchronous>, transform_indices = @transform_2, window_bounds = array<i64: 1, 256>}, {pipeline_mode = #tpu.pipeline_mode<synchronous>, transform_indices = @transform_3, window_bounds = array<i64: 256, 256>}, {pipeline_mode = #tpu.pipeline_mode<synchronous>, transform_indices = @transform_4, window_bounds = array<i64: 1, 256>}, {pipeline_mode = #tpu.pipeline_mode<synchronous>, transform_indices = @transform_5, window_bounds = array<i64: 256, 128>}, {pipeline_mode = #tpu.pipeline_mode<synchronous>, transform_indices = @transform_6, window_bounds = array<i64: 1, 128>}, {transform_indices = @transform_7, window_bounds = array<i64: 16, 128>}]} {
    %c0 = arith.constant 0 : index
    %c0_0 = arith.constant 0 : index
    %0 = vector.load %arg3[%c0, %c0_0] : memref<1x256xf32, #tpu.memory_space<vmem>>, vector<1x256xf32>
    %c0_1 = arith.constant 0 : index
    %c0_2 = arith.constant 0 : index
    %1 = vector.load %arg5[%c0_1, %c0_2] : memref<1x256xf32, #tpu.memory_space<vmem>>, vector<1x256xf32>
    %c0_3 = arith.constant 0 : index
    %c0_4 = arith.constant 0 : index
    %2 = vector.load %arg7[%c0_3, %c0_4] : memref<1x128xf32, #tpu.memory_space<vmem>>, vector<1x128xf32>
    %c0_5 = arith.constant 0 : index
    %c0_6 = arith.constant 0 : index
    %3 = vector.load %arg1[%c0_5, %c0_6] : memref<16x32xf32, #tpu.memory_space<vmem>>, vector<16x32xf32>
    %4 = arith.truncf %3 : vector<16x32xf32> to vector<16x32xbf16>
    %c0_7 = arith.constant 0 : index
    %c0_8 = arith.constant 0 : index
    %5 = vector.load %arg2[%c0_7, %c0_8] : memref<32x256xbf16, #tpu.memory_space<vmem>>, vector<32x256xbf16>
    %cst = arith.constant dense<0.000000e+00> : vector<16x256xf32>
    %6 = tpu.matmul %4, %5, %cst {dimension_numbers = #tpu.dot_dimension_numbers<[1], [0], [0], [1], [0, 0, 1, 1], [], []>} : vector<16x32xbf16>, vector<32x256xbf16>, vector<16x256xf32> -> vector<16x256xf32>
    %7 = vector.broadcast %0 : vector<1x256xf32> to vector<16x256xf32>
    %8 = arith.addf %6, %7 : vector<16x256xf32>
    %cst_9 = arith.constant 0.000000e+00 : f32
    %9 = vector.broadcast %cst_9 : f32 to vector<16x256xf32>
    %10 = arith.maximumf %8, %9 : vector<16x256xf32>
    %11 = arith.truncf %10 : vector<16x256xf32> to vector<16x256xbf16>
    %c0_10 = arith.constant 0 : index
    %c0_11 = arith.constant 0 : index
    %12 = vector.load %arg4[%c0_10, %c0_11] : memref<256x256xbf16, #tpu.memory_space<vmem>>, vector<256x256xbf16>
    %cst_12 = arith.constant dense<0.000000e+00> : vector<16x256xf32>
    %13 = tpu.matmul %11, %12, %cst_12 {dimension_numbers = #tpu.dot_dimension_numbers<[1], [0], [0], [1], [0, 0, 1, 1], [], []>} : vector<16x256xbf16>, vector<256x256xbf16>, vector<16x256xf32> -> vector<16x256xf32>
    %14 = vector.broadcast %1 : vector<1x256xf32> to vector<16x256xf32>
    %15 = arith.addf %13, %14 : vector<16x256xf32>
    %cst_13 = arith.constant 0.000000e+00 : f32
    %16 = vector.broadcast %cst_13 : f32 to vector<16x256xf32>
    %17 = arith.maximumf %15, %16 : vector<16x256xf32>
    %18 = arith.truncf %17 : vector<16x256xf32> to vector<16x256xbf16>
    %c0_14 = arith.constant 0 : index
    %c0_15 = arith.constant 0 : index
    %19 = vector.load %arg6[%c0_14, %c0_15] : memref<256x128xbf16, #tpu.memory_space<vmem>>, vector<256x128xbf16>
    %cst_16 = arith.constant dense<0.000000e+00> : vector<16x128xf32>
    %20 = tpu.matmul %18, %19, %cst_16 {dimension_numbers = #tpu.dot_dimension_numbers<[1], [0], [0], [1], [0, 0, 1, 1], [], []>} : vector<16x256xbf16>, vector<256x128xbf16>, vector<16x128xf32> -> vector<16x128xf32>
    %21 = vector.broadcast %2 : vector<1x128xf32> to vector<16x128xf32>
    %22 = arith.addf %20, %21 : vector<16x128xf32>
    %23 = arith.truncf %22 : vector<16x128xf32> to vector<16x128xbf16>
    %c0_17 = arith.constant 0 : index
    %c0_18 = arith.constant 0 : index
    %24 = vector.load %arg8[%c0_17, %c0_18] : memref<16x128xbf16, #tpu.memory_space<vmem>>, vector<16x128xbf16>
    tpu.vector_store %arg8[%c0_17, %c0_18], %23 {strides = array<i32>} : memref<16x128xbf16, #tpu.memory_space<vmem>>, vector<16x128xbf16>,
    return
  }
  func.func @transform_0(%arg0: i32) -> (i32, i32) {
    %c0_i32 = arith.constant 0 : i32
    %c0_i32_0 = arith.constant 0 : i32
    return %arg0, %c0_i32 : i32, i32
  }
  func.func @transform_1(%arg0: i32) -> (i32, i32) {
    %c0_i32 = arith.constant 0 : i32
    %c0_i32_0 = arith.constant 0 : i32
    %c0_i32_1 = arith.constant 0 : i32
    return %c0_i32, %c0_i32_0 : i32, i32
  }
  func.func @transform_2(%arg0: i32) -> (i32, i32) {
    %c0_i32 = arith.constant 0 : i32
    %c0_i32_0 = arith.constant 0 : i32
    %c0_i32_1 = arith.constant 0 : i32
    return %c0_i32, %c0_i32_0 : i32, i32
  }
  func.func @transform_3(%arg0: i32) -> (i32, i32) {
    %c0_i32 = arith.constant 0 : i32
    %c0_i32_0 = arith.constant 0 : i32
    %c0_i32_1 = arith.constant 0 : i32
    return %c0_i32, %c0_i32_0 : i32, i32
  }
  func.func @transform_4(%arg0: i32) -> (i32, i32) {
    %c0_i32 = arith.constant 0 : i32
    %c0_i32_0 = arith.constant 0 : i32
    %c0_i32_1 = arith.constant 0 : i32
    return %c0_i32, %c0_i32_0 : i32, i32
  }
  func.func @transform_5(%arg0: i32) -> (i32, i32) {
    %c0_i32 = arith.constant 0 : i32
    %c0_i32_0 = arith.constant 0 : i32
    %c0_i32_1 = arith.constant 0 : i32
    return %c0_i32, %c0_i32_0 : i32, i32
  }
  func.func @transform_6(%arg0: i32) -> (i32, i32) {
    %c0_i32 = arith.constant 0 : i32
    %c0_i32_0 = arith.constant 0 : i32
    %c0_i32_1 = arith.constant 0 : i32
    return %c0_i32, %c0_i32_0 : i32, i32
  }
  func.func @transform_7(%arg0: i32) -> (i32, i32) {
    %c0_i32 = arith.constant 0 : i32
    %c0_i32_0 = arith.constant 0 : i32
    return %arg0, %c0_i32 : i32, i32
  }
}

</mosaic_0001>

<bundles_post_ra>
// kernel: tpu_custom_call.1
= control target key start
LH: loop header
LB: loop body
LE: loop exit
PB: predicated region body
PF: predicated region fallthrough
CT: control target
= control target key end

     0   :  { %12 = vsyncpa [#allocation3], 0  ;;  %s1132_s0 = inlined_call_operand.hbm [shape: f32[16,32], index: 0, kind: input, shape index: {}]   ;;  %s1133_s1 = inlined_call_operand.hbm [shape: bf16[32,256], index: 1, kind: input, shape index: {}]   ;;  %s1134_s2 = inlined_call_operand.hbm [shape: f32[1,256], index: 2, kind: input, shape index: {}]   ;;  %s1135_s3 = inlined_call_operand.hbm [shape: bf16[256,256], index: 3, kind: input, shape index: {}]   ;;  %s1136_s4 = inlined_call_operand.vmem [shape: f32[1,256], index: 4, kind: input, shape index: {}]   ;;  %s1137_s5 = inlined_call_operand.hbm [shape: bf16[256,128], index: 5, kind: input, shape index: {}]   ;;  %s1138_s6 = inlined_call_operand.vmem [shape: f32[1,128], index: 6, kind: input, shape index: {}]   ;;  %s1139_s7 = inlined_call_operand.hbm [shape: bf16[16,128], index: 7, kind: output, shape index: {}]  }
   0x1   :  { %13 = vsyncpa [#allocation6], 0 }
   0x2   :  { %14 = vsyncpa [#allocation9], 0 }
   0x3   :  { %15 = vsyncpa [#allocation4], 0  ;;  %s33_s26 = sshll.u32 %s1133_s1, 4  ;;  %s1050_s27 = smov [#allocation5]   ;;  %s34_s26 = int_to_ptr.hbm [resolvable:$true] %s33_s26 }
   0x4   :  { %s35_s28 = sshll.u32 %s1050_s27, 4  ;;  %s57_s8 = sshll.u32 %s1135_s3, 4  ;;  %s36_s28 = int_to_ptr.vmem [resolvable:$true] %s35_s28  ;;  %s58_s8 = int_to_ptr.hbm [resolvable:$true] %s57_s8 }
   0x5   :  { %s1051_s9 = smov 128   ;;  %s1052_s10 = smov 8  }
   0x6   :  { %41 = dma.hbm_to_vmem [thread:$0]  %s34_s26, 512, %s36_s28, [#allocation6], %s1051_s9, %s1051_s9, %s1052_s10  }
   0x7   :  { %s1053_s11 = smov [#allocation8]   ;;  %s20_s15 = sshll.u32 %s1132_s0, 4  ;;  %s21_s15 = int_to_ptr.hbm [resolvable:$true] %s20_s15 }
   0x8   :  { %s59_s12 = sshll.u32 %s1053_s11, 4  ;;  %s47_s17 = sshll.u32 %s1134_s2, 4  ;;  %s60_s12 = int_to_ptr.vmem [resolvable:$true] %s59_s12  ;;  %s48_s17 = int_to_ptr.hbm [resolvable:$true] %s47_s17 }
   0x9   :  { %65 = dma.hbm_to_vmem [thread:$0]  %s58_s8, 4096, %s60_s12, [#allocation9], %s1051_s9, %s1051_s9, %s1052_s10  }
   0xa   :  { %s1054_s18 = smov [#allocation2]   ;;  %s1055_s3 = smov [#allocation7]  }
   0xb   :  { %s22_s19 = sshll.u32 %s1054_s18, 4  ;;  %s49_s20 = sshll.u32 %s1055_s3, 4  ;;  %s23_s19 = int_to_ptr.vmem [resolvable:$true] %s22_s19  ;;  %s50_s20 = int_to_ptr.vmem [resolvable:$true] %s49_s20 }
   0xc   :  { %28 = dma.hbm_to_vmem [thread:$0]  %s21_s15, 256, %s23_s19, [#allocation3], %s1051_s9, %s1051_s9, %s1052_s10  }
   0xd   :  { %s72_s23 = sshll.u32 %s1137_s5, 4  ;;  %s1056_s0 = smov [#allocation10]   ;;  %s73_s23 = int_to_ptr.hbm [resolvable:$true] %s72_s23 }
   0xe   :  { %52 = dma.hbm_to_vmem [thread:$0]  %s48_s17, 32, %s50_s20, [#allocation6]  }
   0xf   :  { %s74_s24 = sshll.u32 %s1056_s0, 4  ;;  %s1057_s25 = smov 64   ;;  %s75_s24 = int_to_ptr.vmem [resolvable:$true] %s74_s24 }
  0x10   :  { %s1058_s26 = smov 4  }
  0x11   :  { %80 = dma.hbm_to_vmem [thread:$0]  %s73_s23, 2048, %s75_s24, [#allocation9], %s1057_s25, %s1057_s25, %s1058_s26  }
  0x12   :  { %1042 = dma.done.wait [#allocation3], 256  }
  0x13   :  { %1043 = vsyncadd [#allocation3], 4294967040 }
  0x14   :  { %1044 = dma.done.wait [#allocation6], 544  }
  0x15   :  { %1045 = vsyncadd [#allocation6], 4294966752 }
  0x16   :  { %1046 = dma.done.wait [#allocation9], 6144  }
  0x17   :  { %1047 = vsyncadd [#allocation9], 4294961152  ;;  %v630_v0 = vld [vmem:[#allocation5 + $0x10] sm:$0xf]  ;;  %v833_v1 = vld [vmem:[#allocation5 + $0x14] sm:$0xf0] }
  0x18   :  { %v832_v2 = vld [vmem:[#allocation5 + $0x14] sm:$0xf]  ;;  %v631_v3 = vor.u32 %v833_v1, %v630_v0  ;;  %v632_v4 = vld [vmem:[#allocation5 + $0x18] sm:$0xf0]  ;;  %v622_v5 = vld [vmem:[#allocation5] sm:$0xf] }
  0x19   :  { %v831_v6 = vld [vmem:[#allocation5 + $0x4] sm:$0xf0]  ;;  %v635_v7 = vor.u32 %v832_v2, %v632_v4  ;;  %v830_v8 = vld [vmem:[#allocation5 + $0x4] sm:$0xf]  ;;  %v624_v9 = vld [vmem:[#allocation5 + $0x8] sm:$0xf0] }
  0x1a   :  { %v107_v10 = vld [vmem:[#allocation2] sm:$0xff]  ;;  %149 = vmatpush.bf16.msra.mxu0 %v631_v3  ;;  %v623_v11 = vor.u32 %v831_v6, %v622_v5  ;;  %v108_v12 = vld [vmem:[#allocation2 + $0x8] sm:$0xff]  ;;  %vm139_vm0 = vcmask 261120   ;;  %v627_v15 = vor.u32 %v830_v8, %v624_v9  ;;  %v688_v27 = vld [vmem:[#allocation8 + $0x60] sm:$0xf]  ;;  %s1059_s28 = smov [#allocation11]  }
  0x1b   :  { %v696_v13 = vld [vmem:[#allocation8 + $0x70] sm:$0xf]  ;;  %v849_v14 = vld [vmem:[#allocation8 + $0x74] sm:$0xf0]  ;;  %163 = vmatpush.bf16.msra.mxu1 %v635_v7  ;;  %v848_v19 = vld [vmem:[#allocation8 + $0x74] sm:$0xf]  ;;  %v109_v24 = vpack.c.bf16 %v108_v12, %v107_v10 }
  0x1c   :  { %v697_v16 = vor.u32 %v849_v14, %v696_v13  ;;  %v760_v17 = vld [vmem:[#allocation8 + $0xf0] sm:$0xf]  ;;  %v865_v18 = vld [vmem:[#allocation8 + $0xf4] sm:$0xf0]  ;;  %v698_v21 = vld [vmem:[#allocation8 + $0x78] sm:$0xf0] }
  0x1d   :  { %v761_v20 = vor.u32 %v865_v18, %v760_v17  ;;  %v864_v22 = vld [vmem:[#allocation8 + $0xf4] sm:$0xf]  ;;  %v762_v23 = vld [vmem:[#allocation8 + $0xf8] sm:$0xf0]  ;;  %v701_v25 = vor.u32 %v848_v19, %v698_v21  ;;  %v847_v28 = vld [vmem:[#allocation8 + $0x64] sm:$0xf0] }
  0x1e   :  { %374 = vmatpush.bf16.msra.mxu2 %v697_v16  ;;  %v765_v26 = vor.u32 %v864_v22, %v762_v23  ;;  %v752_v29 = vld [vmem:[#allocation8 + $0xe0] sm:$0xf]  ;;  %150 = vmatpush.bf16.msra.mxu0 %v623_v11  ;;  %v689_v30 = vor.u32 %v847_v28, %v688_v27  ;;  %v863_v31 = vld [vmem:[#allocation8 + $0xe4] sm:$0xf0]  ;;  %v846_v32 = vld [vmem:[#allocation8 + $0x64] sm:$0xf] }
  0x1f   :  { %388 = vmatpush.bf16.msra.mxu3 %v761_v20  ;;  %v690_v33 = vld [vmem:[#allocation8 + $0x68] sm:$0xf0]  ;;  %164 = vmatpush.bf16.msra.mxu1 %v627_v15  ;;  %v753_v34 = vor.u32 %v863_v31, %v752_v29  ;;  %v862_v36 = vld [vmem:[#allocation8 + $0xe4] sm:$0xf]  ;;  %v680_v38 = vld [vmem:[#allocation8 + $0x50] sm:$0xf] }
  0x20   :  { %v693_v35 = vor.u32 %v846_v32, %v690_v33  ;;  %v754_v37 = vld [vmem:[#allocation8 + $0xe8] sm:$0xf0]  ;;  %v845_v40 = vld [vmem:[#allocation8 + $0x54] sm:$0xf0]  ;;  %v744_v41 = vld [vmem:[#allocation8 + $0xd0] sm:$0xf] }
  0x21   :  { %v757_v39 = vor.u32 %v862_v36, %v754_v37  ;;  %v861_v42 = vld [vmem:[#allocation8 + $0xd4] sm:$0xf0]  ;;  %636 = vmatmul.msk.bf16.vlgmr.msra.gmra.mxu0 %vm139_vm0, %v109_v24  ;;  %v681_v43 = vor.u32 %v845_v40, %v680_v38  ;;  %v844_v44 = vld [vmem:[#allocation8 + $0x54] sm:$0xf]  ;;  %v682_v45 = vld [vmem:[#allocation8 + $0x58] sm:$0xf0] }
  0x22   :  { %402 = vmatpush.bf16.msrb.mxu0 %v701_v25  ;;  %375 = vmatpush.bf16.msra.mxu2 %v689_v30  ;;  %v860_v46 = vld [vmem:[#allocation8 + $0xd4] sm:$0xf]  ;;  %v745_v47 = vor.u32 %v861_v42, %v744_v41  ;;  %v746_v48 = vld [vmem:[#allocation8 + $0xd8] sm:$0xf0]  ;;  %v672_v49 = vld [vmem:[#allocation8 + $0x40] sm:$0xf]  ;;  %v685_v51 = vor.u32 %v844_v44, %v682_v45 }
  0x23   :  { %416 = vmatpush.bf16.msrb.mxu1 %v765_v26  ;;  %389 = vmatpush.bf16.msra.mxu3 %v753_v34  ;;  %v843_v50 = vld [vmem:[#allocation8 + $0x44] sm:$0xf0]  ;;  %v736_v52 = vld [vmem:[#allocation8 + $0xc0] sm:$0xf]  ;;  %v749_v54 = vor.u32 %v860_v46, %v746_v48  ;;  %v842_v55 = vld [vmem:[#allocation8 + $0x44] sm:$0xf] }
  0x24   :  { %637 = vmatmul.msk.bf16.vlgmr.msra.gmra.mxu1 %vm139_vm0, %v109_v24  ;;  %v859_v53 = vld [vmem:[#allocation8 + $0xc4] sm:$0xf0]  ;;  %v674_v56 = vld [vmem:[#allocation8 + $0x48] sm:$0xf0]  ;;  %v673_v57 = vor.u32 %v843_v50, %v672_v49  ;;  %v858_v58 = vld [vmem:[#allocation8 + $0xc4] sm:$0xf] }
  0x25   :  { %v738_v59 = vld [vmem:[#allocation8 + $0xc8] sm:$0xf0]  ;;  %v737_v60 = vor.u32 %v859_v53, %v736_v52  ;;  %v677_v61 = vor.u32 %v842_v55, %v674_v56  ;;  %v664_v63 = vld [vmem:[#allocation8 + $0x30] sm:$0xf]  ;;  %v841_v0 = vld [vmem:[#allocation8 + $0x34] sm:$0xf0] }
  0x26   :  { %403 = vmatpush.bf16.msrb.mxu0 %v693_v35  ;;  %376 = vmatpush.bf16.msra.mxu2 %v681_v43  ;;  %v741_v62 = vor.u32 %v858_v58, %v738_v59  ;;  %v728_v1 = vld [vmem:[#allocation8 + $0xb0] sm:$0xf]  ;;  %v665_v2 = vor.u32 %v841_v0, %v664_v63  ;;  %v857_v3 = vld [vmem:[#allocation8 + $0xb4] sm:$0xf0]  ;;  %v840_v4 = vld [vmem:[#allocation8 + $0x34] sm:$0xf] }
  0x27   :  { %417 = vmatpush.bf16.msrb.mxu1 %v757_v39  ;;  %390 = vmatpush.bf16.msra.mxu3 %v745_v47  ;;  %v666_v5 = vld [vmem:[#allocation8 + $0x38] sm:$0xf0]  ;;  %v729_v6 = vor.u32 %v857_v3, %v728_v1  ;;  %v856_v8 = vld [vmem:[#allocation8 + $0xb4] sm:$0xf]  ;;  %v656_v11 = vld [vmem:[#allocation8 + $0x20] sm:$0xf] }
  0x28   :  { %v669_v7 = vor.u32 %v840_v4, %v666_v5  ;;  %v730_v9 = vld [vmem:[#allocation8 + $0xb8] sm:$0xf0]  ;;  %v839_v12 = vld [vmem:[#allocation8 + $0x24] sm:$0xf0]  ;;  %v720_v14 = vld [vmem:[#allocation8 + $0xa0] sm:$0xf] }
  0x29   :  { %v733_v10 = vor.u32 %v856_v8, %v730_v9  ;;  %v657_v13 = vor.u32 %v839_v12, %v656_v11  ;;  %v855_v15 = vld [vmem:[#allocation8 + $0xa4] sm:$0xf0]  ;;  %v838_v16 = vld [vmem:[#allocation8 + $0x24] sm:$0xf]  ;;  %v658_v18 = vld [vmem:[#allocation8 + $0x28] sm:$0xf0] }
  0x2a   :  { %404 = vmatpush.bf16.msrb.mxu0 %v685_v51  ;;  %377 = vmatpush.bf16.msra.mxu2 %v673_v57  ;;  %v721_v17 = vor.u32 %v855_v15, %v720_v14  ;;  %v854_v19 = vld [vmem:[#allocation8 + $0xa4] sm:$0xf]  ;;  %v722_v20 = vld [vmem:[#allocation8 + $0xa8] sm:$0xf0]  ;;  %v661_v21 = vor.u32 %v838_v16, %v658_v18  ;;  %v648_v23 = vld [vmem:[#allocation8 + $0x10] sm:$0xf] }
  0x2b   :  { %418 = vmatpush.bf16.msrb.mxu1 %v749_v54  ;;  %391 = vmatpush.bf16.msra.mxu3 %v737_v60  ;;  %v725_v22 = vor.u32 %v854_v19, %v722_v20  ;;  %v837_v24 = vld [vmem:[#allocation8 + $0x14] sm:$0xf0]  ;;  %v712_v25 = vld [vmem:[#allocation8 + $0x90] sm:$0xf]  ;;  %v836_v28 = vld [vmem:[#allocation8 + $0x14] sm:$0xf] }
  0x2c   :  { %v649_v26 = vor.u32 %v837_v24, %v648_v23  ;;  %v853_v27 = vld [vmem:[#allocation8 + $0x94] sm:$0xf0]  ;;  %v650_v29 = vld [vmem:[#allocation8 + $0x18] sm:$0xf0]  ;;  %v852_v32 = vld [vmem:[#allocation8 + $0x94] sm:$0xf] }
  0x2d   :  { %v713_v30 = vor.u32 %v853_v27, %v712_v25  ;;  %v653_v31 = vor.u32 %v836_v28, %v650_v29  ;;  %v714_v33 = vld [vmem:[#allocation8 + $0x98] sm:$0xf0]  ;;  %v640_v35 = vld [vmem:[#allocation8] sm:$0xf]  ;;  %v835_v36 = vld [vmem:[#allocation8 + $0x4] sm:$0xf0] }
  0x2e   :  { %405 = vmatpush.bf16.msrb.mxu0 %v677_v61  ;;  %378 = vmatpush.bf16.msra.mxu2 %v665_v2  ;;  %v717_v34 = vor.u32 %v852_v32, %v714_v33  ;;  %v704_v37 = vld [vmem:[#allocation8 + $0x80] sm:$0xf]  ;;  %v641_v38 = vor.u32 %v835_v36, %v640_v35  ;;  %v851_v39 = vld [vmem:[#allocation8 + $0x84] sm:$0xf0]  ;;  %v834_v40 = vld [vmem:[#allocation8 + $0x4] sm:$0xf] }
  0x2f   :  { %419 = vmatpush.bf16.msrb.mxu1 %v741_v62  ;;  %392 = vmatpush.bf16.msra.mxu3 %v729_v6  ;;  %v642_v41 = vld [vmem:[#allocation8 + $0x8] sm:$0xf0]  ;;  %v705_v42 = vor.u32 %v851_v39, %v704_v37  ;;  %v850_v44 = vld [vmem:[#allocation8 + $0x84] sm:$0xf]  ;;  %v881_v47 = vld [vmem:[#allocation10 + $0x78] sm:$0xff]  ;;  %s603_s29 = sshll.u32 %s1059_s28, 4  ;;  %s604_s29 = int_to_ptr.vmem [resolvable:$true] %s603_s29 }
  0x30   :  { %v645_v43 = vor.u32 %v834_v40, %v642_v41  ;;  %v706_v45 = vld [vmem:[#allocation8 + $0x88] sm:$0xf0]  ;;  %v873_v48 = vld [vmem:[#allocation10 + $0x38] sm:$0xff]  ;;  %v880_v49 = vld [vmem:[#allocation10 + $0x70] sm:$0xff]  ;;  %s605_s9 = sshll.u32 %s1139_s7, 4  ;;  %s606_s9 = int_to_ptr.hbm [resolvable:$true] %s605_s9 }
  0x31   :  { %v709_v46 = vor.u32 %v850_v44, %v706_v45  ;;  %v872_v50 = vld [vmem:[#allocation10 + $0x30] sm:$0xff]  ;;  %v879_v51 = vld [vmem:[#allocation10 + $0x68] sm:$0xff]  ;;  %v878_v52 = vld [vmem:[#allocation10 + $0x60] sm:$0xff] }
  0x32   :  { %406 = vmatpush.bf16.msrb.mxu0 %v669_v7  ;;  %379 = vmatpush.bf16.msra.mxu2 %v657_v13  ;;  %v104_v53 = vld [vmem:[#allocation7] sm:$0x3]  ;;  %v871_v6 = vld [vmem:[#allocation10 + $0x28] sm:$0xff]  ;;  %v870_v8 = vld [vmem:[#allocation10 + $0x20] sm:$0xff] }
  0x33   :  { %420 = vmatpush.bf16.msrb.mxu1 %v733_v10  ;;  %393 = vmatpush.bf16.msra.mxu3 %v721_v17  ;;  %v115_v56 = vperm.slane %v104_v53, 0  ;;  %v116_v57 = vperm.slane %v104_v53, 1  ;;  %v877_v7 = vld [vmem:[#allocation10 + $0x58] sm:$0xff]  ;;  %v876_v9 = vld [vmem:[#allocation10 + $0x50] sm:$0xff]  ;;  %v875_v11 = vld [vmem:[#allocation10 + $0x48] sm:$0xff] }
  0x34   :  { %v869_v10 = vld [vmem:[#allocation10 + $0x18] sm:$0xff]  ;;  %v868_v12 = vld [vmem:[#allocation10 + $0x10] sm:$0xff]  ;;  %v874_v13 = vld [vmem:[#allocation10 + $0x40] sm:$0xff] }
  0x35   :  { %v867_v14 = vld [vmem:[#allocation10 + $0x8] sm:$0xff]  ;;  %v866_v15 = vld [vmem:[#allocation10] sm:$0xff] }
  0x36   :  { %407 = vmatpush.bf16.msrb.mxu0 %v661_v21  ;;  %380 = vmatpush.bf16.msra.mxu2 %v649_v26  ;;  %v105_v16 = vld [vmem:[%s1136_s4] sm:$0x3] }
  0x37   :  { %421 = vmatpush.bf16.msrb.mxu1 %v725_v22  ;;  %394 = vmatpush.bf16.msra.mxu3 %v713_v30  ;;  %v211_v18 = vperm.slane %v105_v16, 1  ;;  %v210_v22 = vperm.slane %v105_v16, 0 }
  0x3a   :  { %408 = vmatpush.bf16.msrb.mxu0 %v653_v31  ;;  %381 = vmatpush.bf16.msra.mxu2 %v641_v38 }
  0x3b   :  { %422 = vmatpush.bf16.msrb.mxu1 %v717_v34  ;;  %395 = vmatpush.bf16.msra.mxu3 %v705_v42 }
  0x3e   :  { %409 = vmatpush.bf16.msrb.mxu0 %v645_v43  ;;  %567 = vmatpush.bf16.msrb.mxu2 %v873_v48  ;;  %v897_v43 = vld [vmem:[%s1138_s6] ss:$0 sm:$0xff] }
  0x3f   :  { %423 = vmatpush.bf16.msrb.mxu1 %v709_v46  ;;  %581 = vmatpush.bf16.msrb.mxu3 %v881_v47 }
  0x42   :  { %568 = vmatpush.bf16.msrb.mxu2 %v872_v50 }
  0x43   :  { %582 = vmatpush.bf16.msrb.mxu3 %v880_v49 }
  0x46   :  { %569 = vmatpush.bf16.msrb.mxu2 %v871_v6 }
  0x47   :  { %583 = vmatpush.bf16.msrb.mxu3 %v879_v51 }
  0x4a   :  { %570 = vmatpush.bf16.msrb.mxu2 %v870_v8 }
  0x4b   :  { %584 = vmatpush.bf16.msrb.mxu3 %v878_v52 }
  0x4e   :  { %571 = vmatpush.bf16.msrb.mxu2 %v869_v10 }
  0x4f   :  { %585 = vmatpush.bf16.msrb.mxu3 %v877_v7 }
  0x52   :  { %572 = vmatpush.bf16.msrb.mxu2 %v868_v12 }
  0x53   :  { %586 = vmatpush.bf16.msrb.mxu3 %v876_v9 }
  0x56   :  { %573 = vmatpush.bf16.msrb.mxu2 %v867_v14 }
  0x57   :  { %587 = vmatpush.bf16.msrb.mxu3 %v875_v11 }
  0x5a   :  { %574 = vmatpush.bf16.msrb.mxu2 %v866_v15 }
  0x5b   :  { %588 = vmatpush.bf16.msrb.mxu3 %v874_v13 }
  0x9e   :  { %v152_v54 = vpop.f32.mrf.mxu0 }
  0x9f   :  { %v153_v58 = vadd.f32 %v152_v54, %v115_v56 }
  0xa1   :  { %v166_v55 = vpop.f32.mrf.mxu1  ;;  %v171_v0 = vmax.f32 %v153_v58, 0.0 }
  0xa2   :  { %v167_v59 = vadd.f32 %v166_v55, %v116_v57 }
  0xa4   :  { %v172_v2 = vmax.f32 %v167_v59, 0.0 }
  0xa6   :  { %v154_v60 = vpop.f32.mrf.mxu0 }
  0xa7   :  { %v155_v61 = vadd.f32 %v154_v60, %v115_v56 }
  0xa9   :  { %v168_v62 = vpop.f32.mrf.mxu1  ;;  %v173_v1 = vmax.f32 %v155_v61, 0.0 }
  0xaa   :  { %v169_v63 = vadd.f32 %v168_v62, %v116_v57 }
  0xab   :  { %v175_v4 = vpack.c.bf16 %v173_v1, %v171_v0 }
  0xac   :  { %v174_v3 = vmax.f32 %v169_v63, 0.0 }
  0xad   :  { %382 = vmatmul.bf16.vlgmr.msra.gmra.mxu2 %v175_v4  ;;  %410 = vmatmul.bf16.vlgmr.msrb.gmra.mxu0 %v175_v4 }
  0xae   :  { %v176_v5 = vpack.c.bf16 %v174_v3, %v172_v2 }
  0xb0   :  { %396 = vmatmul.bf16.vlgmr.msra.gmra.mxu3 %v176_v5  ;;  %424 = vmatmul.bf16.vlgmr.msrb.gmra.mxu1 %v176_v5 }
 0x12a   :  { %v411_v17 = vpop.f32.mrf.mxu0 }
 0x12b   :  { %v412_v20 = vadd.f32 %v411_v17, %v211_v18 }
 0x12d   :  { %v425_v19 = vpop.f32.mrf.mxu1 }
 0x12e   :  { %v426_v25 = vadd.f32 %v425_v19, %v412_v20 }
 0x130   :  { %v383_v21 = vpop.f32.mrf.mxu2  ;;  %v431_v30 = vmax.f32 %v426_v25, 0.0 }
 0x131   :  { %v384_v28 = vadd.f32 %v383_v21, %v210_v22 }
 0x132   :  { %v413_v24 = vpop.f32.mrf.mxu0 }
 0x133   :  { %v397_v23 = vpop.f32.mrf.mxu3  ;;  %v414_v26 = vadd.f32 %v413_v24, %v211_v18 }
 0x134   :  { %v398_v33 = vadd.f32 %v397_v23, %v384_v28 }
 0x135   :  { %v427_v27 = vpop.f32.mrf.mxu1 }
 0x136   :  { %v428_v29 = vadd.f32 %v427_v27, %v414_v26  ;;  %v430_v38 = vmax.f32 %v398_v33, 0.0 }
 0x138   :  { %v433_v31 = vmax.f32 %v428_v29, 0.0  ;;  %v385_v32 = vpop.f32.mrf.mxu2 }
 0x139   :  { %v386_v35 = vadd.f32 %v385_v32, %v210_v22 }
 0x13a   :  { %v435_v34 = vpack.c.bf16 %v433_v31, %v431_v30 }
 0x13b   :  { %v399_v36 = vpop.f32.mrf.mxu3 }
 0x13c   :  { %v400_v37 = vadd.f32 %v399_v36, %v386_v35  ;;  %589 = vmatmul.bf16.vlgmr.msrb.gmra.mxu3 %v435_v34 }
 0x13e   :  { %v432_v39 = vmax.f32 %v400_v37, 0.0 }
 0x140   :  { %v434_v40 = vpack.c.bf16 %v432_v39, %v430_v38 }
 0x142   :  { %575 = vmatmul.bf16.vlgmr.msrb.gmra.mxu2 %v434_v40 }
 0x1bf   :  { %v590_v41 = vpop.f32.mrf.mxu3 }
 0x1c5   :  { %v576_v42 = vpop.f32.mrf.mxu2 }
 0x1c6   :  { %v577_v44 = vadd.f32 %v897_v43, %v576_v42 }
 0x1c7   :  { %v592_v47 = vpop.f32.mrf.mxu3 }
 0x1c8   :  { %v591_v48 = vadd.f32 %v590_v41, %v577_v44 }
 0x1cd   :  { %v578_v45 = vpop.f32.mrf.mxu2 }
 0x1ce   :  { %v579_v46 = vadd.f32 %v897_v43, %v578_v45 }
 0x1d0   :  { %v593_v49 = vadd.f32 %v592_v47, %v579_v46 }
 0x1d2   :  { %v885_v50 = vpack.c.bf16 %v593_v49, %v591_v48 }
 0x1d4   :  { %886 = vst [vmem:[#allocation11] sm:$0xff] %v885_v50  }
 0x1d5   :  { %611 = dma.vmem_to_hbm [thread:$0]  %s604_s29, 128, %s606_s9, [#allocation4], %s1057_s25, %s1057_s25, %s1058_s26  }
 0x1d6   :  { %1048 = dma.done.wait [#allocation4], 128  }
 0x1d7   :  { %1049 = vsyncadd [#allocation4], 4294967168 }
 0x1d8   :  { %616 = vsyncpa [#allocation3], 1 }
 0x1d9   :  { %617 = vsyncpa [#allocation6], 1 }
 0x1da   :  { %618 = vsyncpa [#allocation9], 1 }
 0x1db   :  { %619 = vsyncpa [#allocation4], 1 }

</bundles_post_ra>
